<compile_context>
chip_gen: v7x
topology: tpu7x:2x2x1
jax: 0.10.0
libtpu: 0.0.40
codegen_flags: <defaults>
</compile_context>

<pallas_src>
import math

import jax
import jax.numpy as jnp
from jax.experimental import pallas as pl
from jax.experimental.pallas import tpu as pltpu


_TARGET_TRAFFIC_BYTES = 8 << 20    # ~8 MiB of HBM traffic (in + out) per grid step
_MAX_REPACK_COLS = 128 * 1024      # cap on lane-dense repacked row width (elements)


def _zscore_affine_kernel(x_ref, scale_ref, shift_ref, out_ref):
    # x_ref: (tile_rows, tile_cols) native dtype; scale/shift: (1, tile_cols) f32.
    x = x_ref[...].astype(jnp.float32)
    out_ref[...] = (x * scale_ref[...] + shift_ref[...]).astype(out_ref.dtype)


def _round_up(a, m):
    return ((a + m - 1) // m) * m


def _plan_tiling(rows, cols, bytes_per_elem):
    """Pick (tile_rows, tile_cols) targeting ~8 MiB of HBM traffic per step."""
    if 8 * cols * bytes_per_elem <= _TARGET_TRAFFIC_BYTES:
        tile_cols = cols                                   # full feature extent
    else:
        # Very wide feature dim: column-tile in multiples of 128 lanes.
        tile_cols = max(128, (_TARGET_TRAFFIC_BYTES // (8 * bytes_per_elem)) // 128 * 128)
    t = max(1, _TARGET_TRAFFIC_BYTES // (tile_cols * bytes_per_elem))
    if t >= rows:
        tile_rows = rows                                   # full extent: always legal
    else:
        tile_rows = min(max(8, (t // 8) * 8), rows)        # keep sublane dim /8
    return tile_rows, tile_cols


def zscore_filter_forward(x, mean, var, eps=0.01, out_dtype=jnp.float32):
    """Pallas implementation of ZScoreFilter.forward(x, update=False)."""
    n, f = x.shape
    mean = mean.astype(jnp.float32)
    var = var.astype(jnp.float32)

    # (x - mean) * (var + eps)^-0.5  ==  x * scale + shift   (tiny (f,) arrays)
    scale = jax.lax.rsqrt(var + eps)
    shift = -mean * scale

    bytes_per_elem = jnp.dtype(x.dtype).itemsize + jnp.dtype(out_dtype).itemsize

    g = math.gcd(f, 128)
    lane_cols = (f // g) * 128          # lcm(f, 128)
    n_pad = n
    if f % 128 == 0:
        rows, cols = n, f
        x2 = x
        scale2 = scale.reshape(1, f)
        shift2 = shift.reshape(1, f)
    elif lane_cols <= _MAX_REPACK_COLS:
        # Lane-dense repack: view (n_pad, f) as (rows, lcm(f,128)) so every
        # output store is a full 128-lane vst; stats tile periodically.
        q = 128 // g                    # batch rows folded into one lane-dense row
        n_pad = _round_up(n, q)
        x_p = x if n_pad == n else jnp.pad(x, ((0, n_pad - n), (0, 0)))
        rows, cols = n_pad // q, lane_cols
        x2 = x_p.reshape(rows, cols)
        scale2 = jnp.tile(scale, q).reshape(1, cols)
        shift2 = jnp.tile(shift, q).reshape(1, cols)
    else:
        # Huge, 128-unfriendly feature dim: stream as-is (only the <128-lane
        # tail of each row tile takes masked stores -- negligible fraction).
        rows, cols = n, f
        x2 = x
        scale2 = scale.reshape(1, f)
        shift2 = shift.reshape(1, f)

    tile_rows, tile_cols = _plan_tiling(rows, cols, bytes_per_elem)
    nc = pl.cdiv(cols, tile_cols)
    nr = pl.cdiv(rows, tile_rows)
    if nc * nr == 1 and rows >= 16:
        # Guarantee >=2 grid steps so both v7x TensorCores get work.
        tile_rows = _round_up((rows + 1) // 2, 8)
        nr = pl.cdiv(rows, tile_rows)

    out = pl.pallas_call(
        _zscore_affine_kernel,
        out_shape=jax.ShapeDtypeStruct((rows, cols), out_dtype),
        grid=(nc, nr),                  # columns outer: stats blocks stay put over rows
        in_specs=[
            pl.BlockSpec((tile_rows, tile_cols), lambda c, r: (r, c)),   # x tile
            pl.BlockSpec((1, tile_cols), lambda c, r: (0, c)),           # scale
            pl.BlockSpec((1, tile_cols), lambda c, r: (0, c)),           # shift
        ],
        out_specs=pl.BlockSpec((tile_rows, tile_cols), lambda c, r: (r, c)),
        compiler_params=pltpu.CompilerParams(
            dimension_semantics=("parallel", "parallel"),
            vmem_limit_bytes=40 << 20,
        ),
    )(x2, scale2, shift2)

    out = out.reshape(n_pad, f)
    if n_pad != n:
        out = out[:n]
    return out


if __name__ == "__main__":
    key = jax.random.PRNGKey(0)
    eps = 0.01

    def ref_forward(x, mean, var):
        return (x - mean[None, :]) * (var[None, :] + eps) ** (-0.5)

    cases = [
        (8, 32),     # f divides 128: lane-dense repack, no batch pad
        (10, 48),    # lcm(48,128)=384: repack + batch pad 10 -> 16
        (4, 256),    # f % 128 == 0: native layout
        (64, 128),   # forces a >=2-step row grid (megacore split)
    ]
    keys = jax.random.split(key, len(cases) * 3)
    for idx, (batch, size) in enumerate(cases):
        kx, km, kv = keys[3 * idx], keys[3 * idx + 1], keys[3 * idx + 2]
        x = jax.random.normal(kx, (batch, size), dtype=jnp.float32) * 3.0 + 1.5

        # Buffers exactly as in ZScoreFilter.__init__ (fresh filter).
        mean0 = jnp.zeros((size,), dtype=jnp.float32)
        var0 = jnp.ones((size,), dtype=jnp.float32)
        out0 = jax.block_until_ready(zscore_filter_forward(x, mean0, var0, eps))
        assert out0.shape == (batch, size)
        assert jnp.allclose(out0, ref_forward(x, mean0, var0), atol=1e-5, rtol=1e-5), \
            f"mismatch (init buffers) at case {(batch, size)}"

        # Non-trivial buffers (as after some update() calls).
        mean1 = jax.random.normal(km, (size,), dtype=jnp.float32)
        var1 = jax.nn.softplus(jax.random.normal(kv, (size,), dtype=jnp.float32)) + 0.1
        out1 = jax.block_until_ready(zscore_filter_forward(x, mean1, var1, eps))
        assert jnp.allclose(out1, ref_forward(x, mean1, var1), atol=1e-5, rtol=1e-5), \
            f"mismatch (running buffers) at case {(batch, size)}"

    print("KERNEL_OK")
</pallas_src>

<mosaic_0001>
module attributes {stable_mosaic.version = 11 : i64} {
  func.func @_zscore_affine_kernel(%arg0: i32, %arg1: i32, %arg2: memref<2x128xf32, #tpu.memory_space<vmem>>, %arg3: memref<1x128xf32, #tpu.memory_space<vmem>>, %arg4: memref<1x128xf32, #tpu.memory_space<vmem>>, %arg5: memref<2x128xf32, #tpu.memory_space<vmem>>) attributes {dimension_semantics = [#tpu.dimension_semantics<parallel>, #tpu.dimension_semantics<parallel>], iteration_bounds = array<i64: 1, 1>, scalar_prefetch = 0 : i64, scratch_operands = 0 : i64, tpu.core_type = #tpu.core_type<tc>, window_params = [{transform_indices = @transform_0, window_bounds = array<i64: 2, 128>}, {transform_indices = @transform_1, window_bounds = array<i64: 1, 128>}, {transform_indices = @transform_2, window_bounds = array<i64: 1, 128>}, {transform_indices = @transform_3, window_bounds = array<i64: 2, 128>}]} {
    %c0 = arith.constant 0 : index
    %c0_0 = arith.constant 0 : index
    %0 = vector.load %arg2[%c0, %c0_0] : memref<2x128xf32, #tpu.memory_space<vmem>>, vector<2x128xf32>
    %c0_1 = arith.constant 0 : index
    %c0_2 = arith.constant 0 : index
    %1 = vector.load %arg3[%c0_1, %c0_2] : memref<1x128xf32, #tpu.memory_space<vmem>>, vector<1x128xf32>
    %2 = vector.broadcast %1 : vector<1x128xf32> to vector<2x128xf32>
    %3 = arith.mulf %0, %2 : vector<2x128xf32>
    %c0_3 = arith.constant 0 : index
    %c0_4 = arith.constant 0 : index
    %4 = vector.load %arg4[%c0_3, %c0_4] : memref<1x128xf32, #tpu.memory_space<vmem>>, vector<1x128xf32>
    %5 = vector.broadcast %4 : vector<1x128xf32> to vector<2x128xf32>
    %6 = arith.addf %3, %5 : vector<2x128xf32>
    %c0_5 = arith.constant 0 : index
    %c0_6 = arith.constant 0 : index
    %7 = vector.load %arg5[%c0_5, %c0_6] : memref<2x128xf32, #tpu.memory_space<vmem>>, vector<2x128xf32>
    tpu.vector_store %arg5[%c0_5, %c0_6], %6 {strides = array<i32>} : memref<2x128xf32, #tpu.memory_space<vmem>>, vector<2x128xf32>,
    return
  }
  func.func @transform_0(%arg0: i32, %arg1: i32) -> (i32, i32) {
    %c0_i32 = arith.constant 0 : i32
    return %arg1, %arg0 : i32, i32
  }
  func.func @transform_1(%arg0: i32, %arg1: i32) -> (i32, i32) {
    %c0_i32 = arith.constant 0 : i32
    %c0_i32_0 = arith.constant 0 : i32
    return %c0_i32, %arg0 : i32, i32
  }
  func.func @transform_2(%arg0: i32, %arg1: i32) -> (i32, i32) {
    %c0_i32 = arith.constant 0 : i32
    %c0_i32_0 = arith.constant 0 : i32
    return %c0_i32, %arg0 : i32, i32
  }
  func.func @transform_3(%arg0: i32, %arg1: i32) -> (i32, i32) {
    %c0_i32 = arith.constant 0 : i32
    return %arg1, %arg0 : i32, i32
  }
}

</mosaic_0001>

<bundles_post_ra>
// kernel: tpu_custom_call.1
= control target key start
LH: loop header
LB: loop body
LE: loop exit
PB: predicated region body
PF: predicated region fallthrough
CT: control target
= control target key end

     0   :  { %8 = vsyncpa [#allocation3], 0  ;;  %s164_s0 = inlined_call_operand.hbm [shape: f32[2,128], index: 0, kind: input, shape index: {}]   ;;  %s165_s1 = inlined_call_operand.vmem [shape: f32[1,128], index: 1, kind: input, shape index: {}]   ;;  %s166_s2 = inlined_call_operand.vmem [shape: f32[1,128], index: 2, kind: input, shape index: {}]   ;;  %s167_s3 = inlined_call_operand.hbm [shape: f32[2,128], index: 3, kind: output, shape index: {}]  }
   0x1   :  { %9 = vsyncpa [#allocation4], 0  ;;  %s112_s12 = smov [#allocation2]   ;;  %s64_s16 = scalar_lea.hbm %s164_s0, 32 }
   0x2   :  { %s16_s13 = sshll.u32 %s112_s12, 4  ;;  %p65_p0 = scmp.ne.s32.totalorder %s164_s0, %s64_s16  ;;  %s17_s13 = int_to_ptr.vmem [resolvable:$true] %s16_s13 }
   0x3   :  { %p68_p1 = scmp.lt.u32.totalorder %s64_s16, %s164_s0 }
   0x5   :  { %p70_p2 = pnand %p68_p1, %p65_p0 }
   0x7   :  { %73 = shalt.err (!%p70_p2)
}
   0x8   :  { %s74_s21 = scalar_lea.vmem %s17_s13, 32  ;;  %p79_p4 = scmp.lt.s32.totalorder %s17_s13, %s17_s13 }
   0x9   :  { %p75_p3 = scmp.ne.s32.totalorder %s17_s13, %s74_s21  ;;  %p80_p5 = scmp.lt.s32.totalorder %s74_s21, %s74_s21 }
   0xb   :  { %p81_p6 = por %p80_p5, %p79_p4 }
   0xd   :  { %p82_p7 = pnand %p81_p6, %p75_p3 }
   0xf   :  { %85 = shalt.err (!%p82_p7)
}
  0x10   :  { %19 = dma.hbm_to_vmem [thread:$0]  %s164_s0, 32, %s17_s13, [#allocation3]  }
  0x11   :  { %108 = dma.done.wait [#allocation3], 32  }
  0x12   :  { %109 = vsyncadd [#allocation3], 4294967264  ;;  %s113_s24 = smov [#allocation5]   ;;  %v27_v0 = vld [vmem:[#allocation2] sm:$0x3] }
  0x13   :  { %s51_s25 = sshll.u32 %s113_s24, 4  ;;  %v60_v1 = vld [vmem:[%s165_s1] ss:$0 sm:$0xff]  ;;  %s52_s25 = int_to_ptr.vmem [resolvable:$true] %s51_s25 }
  0x14   :  { %v61_v2 = vld [vmem:[%s166_s2] ss:$0 sm:$0xff]  ;;  %v35_v3 = vmul.f32 %v60_v1, %v27_v0  ;;  %s86_s30 = scalar_lea.vmem %s52_s25, 32  ;;  %p91_p9 = scmp.lt.s32.totalorder %s52_s25, %s52_s25 }
  0x15   :  { %p87_p8 = scmp.ne.s32.totalorder %s52_s25, %s86_s30  ;;  %p92_p10 = scmp.lt.s32.totalorder %s86_s30, %s86_s30 }
  0x16   :  { %v43_v4 = vadd.f32 %v61_v2, %v35_v3 }
  0x17   :  { %p93_p11 = por %p92_p10, %p91_p9 }
  0x18   :  { %44 = vst [vmem:[#allocation5] sm:$0x3] %v43_v4 }
  0x19   :  { %p94_p12 = pnand %p93_p11, %p87_p8 }
  0x1b   :  { %97 = shalt.err (!%p94_p12)
}
  0x1c   :  { %s98_s5 = scalar_lea.hbm %s167_s3, 32 }
  0x1d   :  { %p99_p13 = scmp.ne.s32.totalorder %s167_s3, %s98_s5  ;;  %p102_p0 = scmp.lt.u32.totalorder %s98_s5, %s167_s3 }
  0x1f   :  { %p104_p1 = pnand %p102_p0, %p99_p13 }
  0x21   :  { %107 = shalt.err (!%p104_p1)
}
  0x22   :  { %54 = dma.vmem_to_hbm [thread:$0]  %s52_s25, 32, %s167_s3, [#allocation4]  }
  0x23   :  { %110 = dma.done.wait [#allocation4], 32  }
  0x24   :  { %111 = vsyncadd [#allocation4], 4294967264 }
  0x25   :  { %58 = vsyncpa [#allocation3], 1 }
  0x26   :  { %59 = vsyncpa [#allocation4], 1 }

</bundles_post_ra>
